<compile_context>
chip_gen: v7x
topology: tpu7x:2x2x1
jax: 0.10.0
libtpu: 0.0.40
codegen_flags: <defaults>
</compile_context>

<pallas_src>
import jax
import jax.numpy as jnp
from jax import lax
from jax.experimental import pallas as pl
from jax.experimental.pallas import tpu as pltpu


def conv_block_kernel(xb_ref, wm_ref, b_ref, w1_ref, w2_ref, o_ref):
    # xb_ref : (1, H, 3*(W+2)*Cin) bf16  im2row'd padded input,
    #          row m < H/2 -> output row h=2m ; row m >= H/2 -> h=2(m-H/2)+1
    # wm_ref : (3*(W+2)*Cin, W*Cout) bf16 banded conv matrix,
    #          column = (w%2)*(W/2*Cout) + (w//2)*Cout + co   (parity-major W)
    # b_ref  : (1, W*Cout) f32  conv bias tiled to the same column layout
    # w1_ref : (Cred, Cout) f32 SE fc1 weight (PyTorch layout)
    # w2_ref : (Cred, Cout) f32 SE fc2 weight (transposed to channels-on-lanes)
    # o_ref  : (1, H/2, (W/2)*Cout) f32, lane = wp*Cout + co
    H = xb_ref.shape[1]
    Hp = H // 2
    WCout = wm_ref.shape[1]
    half = WCout // 2                      # (W/2)*Cout
    Cout = w1_ref.shape[1]
    Wp = half // Cout
    inv_hw = 1.0 / float(Hp * Wp)

    # --- 3x3 conv (padding=1) as a single MXU matmul; bf16 in, f32 accumulate.
    y = jnp.dot(xb_ref[0], wm_ref[...], preferred_element_type=jnp.float32)
    y = y + b_ref[...]                     # (H, W*Cout)

    # --- 2x2 max pool: H via aligned sublane-tile halves, W via lane halves.
    yh = jnp.maximum(y[:Hp, :], y[Hp:, :])         # (Hp, W*Cout)
    p = jnp.maximum(yh[:, :half], yh[:, half:])    # (Hp, Wp*Cout), lane = wp*Cout+co

    # --- Dropout: identity in eval mode.

    # --- SE squeeze: per-channel mean (sublane reduce + lane-halving folds, no MXU).
    t = jnp.sum(p, axis=0, keepdims=True)          # (1, Wp*Cout)
    width = half
    while width > Cout:                            # Wp is a power of two
        width //= 2
        t = t[:, :width] + t[:, width:2 * width]
    s = t * inv_hw                                 # (1, Cout)

    # --- SE excitation on the VPU: broadcast-multiply + reduce (tiny FCs, no bias).
    h1 = jnp.maximum(jnp.sum(s * w1_ref[...], axis=1, keepdims=True), 0.0)   # (Cred, 1)
    g = jax.nn.sigmoid(jnp.sum(h1 * w2_ref[...], axis=0, keepdims=True))     # (1, Cout)

    # --- channel-wise scale + final ReLU.
    gate = jnp.concatenate([g] * Wp, axis=1)       # (1, Wp*Cout)
    out = jnp.maximum(p * gate, 0.0)
    o_ref[...] = out[None].astype(o_ref.dtype)


def _build_conv_matrix(w_hwio, W):
    """(3,3,Cin,Cout) HWIO weight -> banded (3*(W+2)*Cin, W*Cout) matrix.

    Row index   = kh*(W+2)*Cin + (w+kw)*Cin + ci   (matches the im2row slab layout)
    Column index= (w%2)*(W//2*Cout) + (w//2)*Cout + co  (parity-major W)
    """
    KH, KW, Cin, Cout = w_hwio.shape
    RL = (W + 2) * Cin
    kh, kw, ci, co, w = jnp.meshgrid(
        jnp.arange(KH), jnp.arange(KW), jnp.arange(Cin),
        jnp.arange(Cout), jnp.arange(W), indexing="ij")
    rows = kh * RL + (w + kw) * Cin + ci
    cols = (w % 2) * ((W // 2) * Cout) + (w // 2) * Cout + co
    vals = jnp.broadcast_to(w_hwio[:, :, :, :, None], rows.shape)
    mat = jnp.zeros((KH * RL, W * Cout), w_hwio.dtype)
    return mat.at[rows.ravel(), cols.ravel()].set(vals.ravel())


def conv_block(x_nchw, w_hwio, bias, w1, w2):
    """ConvBlock forward (eval mode). x: (N,Cin,H,W) f32 -> (N,Cout,H//2,W//2)."""
    N, Cin, H, W = x_nchw.shape
    KH, KW, _, Cout = w_hwio.shape
    Cred = w1.shape[-1]
    Hp, Wp = H // 2, W // 2
    assert H % 2 == 0 and W % 2 == 0
    assert Wp & (Wp - 1) == 0, "W//2 must be a power of two for the lane-fold squeeze"

    # ---- wrapper-side prep (tiny tensors; fuses into a single XLA glue pass) ----
    x_nhwc = jnp.transpose(x_nchw, (0, 2, 3, 1))
    x_flat = jnp.pad(x_nhwc, ((0, 0), (1, 1), (1, 1), (0, 0))).reshape(
        N, H + 2, (W + 2) * Cin)
    rows = jnp.concatenate([jnp.arange(0, H, 2), jnp.arange(1, H, 2)])  # even h, then odd h
    xb = jnp.concatenate([x_flat[:, rows + kh, :] for kh in range(KH)], axis=2)
    xb = xb.astype(jnp.bfloat16)                                   # bf16-native MXU, 2x less DMA

    wm = _build_conv_matrix(w_hwio, W).astype(jnp.bfloat16)        # (3*(W+2)*Cin, W*Cout)
    b_tiled = jnp.tile(bias, W).reshape(1, W * Cout).astype(jnp.float32)
    w1k = w1.T.astype(jnp.float32)                                 # (Cred, Cout)
    w2k = w2.astype(jnp.float32)                                   # (Cred, Cout)

    K = KH * (W + 2) * Cin

    out = pl.pallas_call(
        conv_block_kernel,
        out_shape=jax.ShapeDtypeStruct((N, Hp, Wp * Cout), jnp.float32),
        grid=(N,),
        in_specs=[
            pl.BlockSpec((1, H, K), lambda n: (n, 0, 0)),
            pl.BlockSpec((K, W * Cout), lambda n: (0, 0)),
            pl.BlockSpec((1, W * Cout), lambda n: (0, 0)),
            pl.BlockSpec((Cred, Cout), lambda n: (0, 0)),
            pl.BlockSpec((Cred, Cout), lambda n: (0, 0)),
        ],
        out_specs=pl.BlockSpec((1, Hp, Wp * Cout), lambda n: (n, 0, 0)),
        compiler_params=pltpu.CompilerParams(dimension_semantics=("parallel",)),
    )(xb, wm, b_tiled, w1k, w2k)

    # lane = wp*Cout + co  ->  (N, Hp, Wp, Cout) -> NCHW
    return jnp.transpose(out.reshape(N, Hp, Wp, Cout), (0, 3, 1, 2)).astype(x_nchw.dtype)


def reference_conv_block(x_nchw, w_hwio, bias, w1, w2):
    """Pure-JAX f32 reference matching PyTorch ConvBlock (eval mode)."""
    y = lax.conv_general_dilated(
        x_nchw, w_hwio, window_strides=(1, 1), padding=((1, 1), (1, 1)),
        dimension_numbers=("NCHW", "HWIO", "NCHW"))
    y = y + bias.reshape(1, -1, 1, 1)
    y = lax.reduce_window(y, -jnp.inf, lax.max,
                          window_dimensions=(1, 1, 2, 2),
                          window_strides=(1, 1, 2, 2), padding="VALID")
    s = jnp.mean(y, axis=(2, 3))                         # (N, Cout)
    h = jnp.maximum(s @ w1, 0.0)
    g = jax.nn.sigmoid(h @ w2)                           # (N, Cout)
    y = y * g[:, :, None, None]
    return jnp.maximum(y, 0.0)


if __name__ == "__main__":
    # Module config: ConvBlock(in_channels=4, out_channels=8, reduction=4, dropout=0.1)
    N, Cin, H, W = 2, 4, 16, 16
    Cout, reduction = 8, 4
    Cred = Cout // reduction

    key = jax.random.PRNGKey(0)
    kx, kw, kb, k1, k2 = jax.random.split(key, 5)
    x = jax.random.normal(kx, (N, Cin, H, W), jnp.float32)
    w_hwio = jax.random.normal(kw, (3, 3, Cin, Cout), jnp.float32) * 0.1
    bias = jax.random.normal(kb, (Cout,), jnp.float32) * 0.1
    w1 = jax.random.normal(k1, (Cout, Cred), jnp.float32) * 0.1   # SE fc1 (bias=False), x@W convention
    w2 = jax.random.normal(k2, (Cred, Cout), jnp.float32) * 0.1   # SE fc2 (bias=False), x@W convention

    out = jax.block_until_ready(jax.jit(conv_block)(x, w_hwio, bias, w1, w2))
    ref = jax.block_until_ready(reference_conv_block(x, w_hwio, bias, w1, w2))

    assert out.shape == (N, Cout, H // 2, W // 2), out.shape
    max_err = float(jnp.max(jnp.abs(out - ref)))
    # bf16 MXU inputs with f32 accumulation -> loosened tolerance per review.
    assert jnp.allclose(out, ref, rtol=3e-2, atol=3e-2), max_err
    print("KERNEL_OK")
</pallas_src>

<mosaic_0001>
module attributes {stable_mosaic.version = 11 : i64} {
  func.func @conv_block_kernel(%arg0: i32, %arg1: memref<1x16x216xbf16, #tpu.memory_space<vmem>>, %arg2: memref<216x128xbf16, #tpu.memory_space<vmem>>, %arg3: memref<1x128xf32, #tpu.memory_space<vmem>>, %arg4: memref<2x8xf32, #tpu.memory_space<vmem>>, %arg5: memref<2x8xf32, #tpu.memory_space<vmem>>, %arg6: memref<1x8x64xf32, #tpu.memory_space<vmem>>) attributes {dimension_semantics = [#tpu.dimension_semantics<parallel>], iteration_bounds = array<i64: 2>, scalar_prefetch = 0 : i64, scratch_operands = 0 : i64, tpu.core_type = #tpu.core_type<tc>, window_params = [{transform_indices = @transform_0, window_bounds = array<i64: 1, 16, 216>}, {pipeline_mode = #tpu.pipeline_mode<synchronous>, transform_indices = @transform_1, window_bounds = array<i64: 216, 128>}, {pipeline_mode = #tpu.pipeline_mode<synchronous>, transform_indices = @transform_2, window_bounds = array<i64: 1, 128>}, {pipeline_mode = #tpu.pipeline_mode<synchronous>, transform_indices = @transform_3, window_bounds = array<i64: 2, 8>}, {pipeline_mode = #tpu.pipeline_mode<synchronous>, transform_indices = @transform_4, window_bounds = array<i64: 2, 8>}, {transform_indices = @transform_5, window_bounds = array<i64: 1, 8, 64>}]} {
    %c0 = arith.constant 0 : index
    %c0_0 = arith.constant 0 : index
    %c0_1 = arith.constant 0 : index
    %0 = vector.load %arg1[%c0, %c0_0, %c0_1] : memref<1x16x216xbf16, #tpu.memory_space<vmem>>, vector<1x16x216xbf16>
    %1 = vector.shape_cast %0 : vector<1x16x216xbf16> to vector<16x216xbf16>
    %c0_2 = arith.constant 0 : index
    %c0_3 = arith.constant 0 : index
    %2 = vector.load %arg2[%c0_2, %c0_3] : memref<216x128xbf16, #tpu.memory_space<vmem>>, vector<216x128xbf16>
    %cst = arith.constant dense<0.000000e+00> : vector<16x128xf32>
    %3 = tpu.matmul %1, %2, %cst {dimension_numbers = #tpu.dot_dimension_numbers<[1], [0], [0], [1], [0, 0, 1, 1], [], []>} : vector<16x216xbf16>, vector<216x128xbf16>, vector<16x128xf32> -> vector<16x128xf32>
    %c0_4 = arith.constant 0 : index
    %c0_5 = arith.constant 0 : index
    %4 = vector.load %arg3[%c0_4, %c0_5] : memref<1x128xf32, #tpu.memory_space<vmem>>, vector<1x128xf32>
    %5 = vector.broadcast %4 : vector<1x128xf32> to vector<16x128xf32>
    %6 = arith.addf %3, %5 : vector<16x128xf32>
    %7 = vector.extract_strided_slice %6 {offsets = [0, 0], sizes = [8, 128], strides = [1, 1]} : vector<16x128xf32> to vector<8x128xf32>
    %8 = vector.extract_strided_slice %6 {offsets = [8, 0], sizes = [8, 128], strides = [1, 1]} : vector<16x128xf32> to vector<8x128xf32>
    %9 = arith.maximumf %7, %8 : vector<8x128xf32>
    %10 = vector.extract_strided_slice %9 {offsets = [0, 0], sizes = [8, 64], strides = [1, 1]} : vector<8x128xf32> to vector<8x64xf32>
    %11 = vector.extract_strided_slice %9 {offsets = [0, 64], sizes = [8, 64], strides = [1, 1]} : vector<8x128xf32> to vector<8x64xf32>
    %12 = arith.maximumf %10, %11 : vector<8x64xf32>
    %cst_6 = arith.constant dense<0.000000e+00> : vector<64xf32>
    %13 = vector.multi_reduction <add>, %12, %cst_6 [0] : vector<8x64xf32> to vector<64xf32>
    %14 = vector.shape_cast %13 : vector<64xf32> to vector<1x64xf32>
    %15 = vector.extract_strided_slice %14 {offsets = [0, 0], sizes = [1, 32], strides = [1, 1]} : vector<1x64xf32> to vector<1x32xf32>
    %16 = vector.extract_strided_slice %14 {offsets = [0, 32], sizes = [1, 32], strides = [1, 1]} : vector<1x64xf32> to vector<1x32xf32>
    %17 = arith.addf %15, %16 : vector<1x32xf32>
    %18 = vector.extract_strided_slice %17 {offsets = [0, 0], sizes = [1, 16], strides = [1, 1]} : vector<1x32xf32> to vector<1x16xf32>
    %19 = vector.extract_strided_slice %17 {offsets = [0, 16], sizes = [1, 16], strides = [1, 1]} : vector<1x32xf32> to vector<1x16xf32>
    %20 = arith.addf %18, %19 : vector<1x16xf32>
    %21 = vector.extract_strided_slice %20 {offsets = [0, 0], sizes = [1, 8], strides = [1, 1]} : vector<1x16xf32> to vector<1x8xf32>
    %22 = vector.extract_strided_slice %20 {offsets = [0, 8], sizes = [1, 8], strides = [1, 1]} : vector<1x16xf32> to vector<1x8xf32>
    %23 = arith.addf %21, %22 : vector<1x8xf32>
    %cst_7 = arith.constant 1.562500e-02 : f32
    %24 = vector.broadcast %cst_7 : f32 to vector<1x8xf32>
    %25 = arith.mulf %23, %24 : vector<1x8xf32>
    %c0_8 = arith.constant 0 : index
    %c0_9 = arith.constant 0 : index
    %26 = vector.load %arg4[%c0_8, %c0_9] : memref<2x8xf32, #tpu.memory_space<vmem>>, vector<2x8xf32>
    %27 = vector.broadcast %25 : vector<1x8xf32> to vector<2x8xf32>
    %28 = arith.mulf %27, %26 : vector<2x8xf32>
    %cst_10 = arith.constant dense<0.000000e+00> : vector<2xf32>
    %29 = vector.multi_reduction <add>, %28, %cst_10 [1] : vector<2x8xf32> to vector<2xf32>
    %30 = vector.shape_cast %29 : vector<2xf32> to vector<2x1xf32>
    %cst_11 = arith.constant 0.000000e+00 : f32
    %31 = vector.broadcast %cst_11 : f32 to vector<2x1xf32>
    %32 = arith.maximumf %30, %31 : vector<2x1xf32>
    %c0_12 = arith.constant 0 : index
    %c0_13 = arith.constant 0 : index
    %33 = vector.load %arg5[%c0_12, %c0_13] : memref<2x8xf32, #tpu.memory_space<vmem>>, vector<2x8xf32>
    %34 = vector.broadcast %32 : vector<2x1xf32> to vector<2x8xf32>
    %35 = arith.mulf %34, %33 : vector<2x8xf32>
    %cst_14 = arith.constant dense<0.000000e+00> : vector<8xf32>
    %36 = vector.multi_reduction <add>, %35, %cst_14 [0] : vector<2x8xf32> to vector<8xf32>
    %37 = vector.shape_cast %36 : vector<8xf32> to vector<1x8xf32>
    %38 = arith.negf %37 : vector<1x8xf32>
    %39 = math.exp %38 : vector<1x8xf32>
    %cst_15 = arith.constant 1.000000e+00 : f32
    %40 = vector.broadcast %cst_15 : f32 to vector<1x8xf32>
    %41 = arith.addf %40, %39 : vector<1x8xf32>
    %42 = arith.divf %40, %41 : vector<1x8xf32>
    %43 = tpu.concatenate %42, %42, %42, %42, %42, %42, %42, %42 in 1 : vector<1x8xf32>, vector<1x8xf32>, vector<1x8xf32>, vector<1x8xf32>, vector<1x8xf32>, vector<1x8xf32>, vector<1x8xf32>, vector<1x8xf32> -> vector<1x64xf32>
    %44 = vector.broadcast %43 : vector<1x64xf32> to vector<8x64xf32>
    %45 = arith.mulf %12, %44 : vector<8x64xf32>
    %cst_16 = arith.constant 0.000000e+00 : f32
    %46 = vector.broadcast %cst_16 : f32 to vector<8x64xf32>
    %47 = arith.maximumf %45, %46 : vector<8x64xf32>
    %48 = vector.shape_cast %47 : vector<8x64xf32> to vector<1x8x64xf32>
    %c0_17 = arith.constant 0 : index
    %c0_18 = arith.constant 0 : index
    %c0_19 = arith.constant 0 : index
    %49 = vector.load %arg6[%c0_17, %c0_18, %c0_19] : memref<1x8x64xf32, #tpu.memory_space<vmem>>, vector<1x8x64xf32>
    tpu.vector_store %arg6[%c0_17, %c0_18, %c0_19], %48 {strides = array<i32>} : memref<1x8x64xf32, #tpu.memory_space<vmem>>, vector<1x8x64xf32>,
    return
  }
  func.func @transform_0(%arg0: i32) -> (i32, i32, i32) {
    %c0_i32 = arith.constant 0 : i32
    %c0_i32_0 = arith.constant 0 : i32
    %c0_i32_1 = arith.constant 0 : i32
    return %arg0, %c0_i32, %c0_i32_0 : i32, i32, i32
  }
  func.func @transform_1(%arg0: i32) -> (i32, i32) {
    %c0_i32 = arith.constant 0 : i32
    %c0_i32_0 = arith.constant 0 : i32
    %c0_i32_1 = arith.constant 0 : i32
    return %c0_i32, %c0_i32_0 : i32, i32
  }
  func.func @transform_2(%arg0: i32) -> (i32, i32) {
    %c0_i32 = arith.constant 0 : i32
    %c0_i32_0 = arith.constant 0 : i32
    %c0_i32_1 = arith.constant 0 : i32
    return %c0_i32, %c0_i32_0 : i32, i32
  }
  func.func @transform_3(%arg0: i32) -> (i32, i32) {
    %c0_i32 = arith.constant 0 : i32
    %c0_i32_0 = arith.constant 0 : i32
    %c0_i32_1 = arith.constant 0 : i32
    return %c0_i32, %c0_i32_0 : i32, i32
  }
  func.func @transform_4(%arg0: i32) -> (i32, i32) {
    %c0_i32 = arith.constant 0 : i32
    %c0_i32_0 = arith.constant 0 : i32
    %c0_i32_1 = arith.constant 0 : i32
    return %c0_i32, %c0_i32_0 : i32, i32
  }
  func.func @transform_5(%arg0: i32) -> (i32, i32, i32) {
    %c0_i32 = arith.constant 0 : i32
    %c0_i32_0 = arith.constant 0 : i32
    %c0_i32_1 = arith.constant 0 : i32
    return %arg0, %c0_i32, %c0_i32_0 : i32, i32, i32
  }
}

</mosaic_0001>

<bundles_post_ra>
// kernel: tile.8
= control target key start
LH: loop header
LB: loop body
LE: loop exit
PB: predicated region body
PF: predicated region fallthrough
CT: control target
= control target key end

     0   :  { %s28_s0 = inlined_call_operand.vmem [shape: f32[8], index: 0, kind: input, shape index: {}]   ;;  %s29_s1 = inlined_call_operand.vmem [shape: f32[16,8], index: 1, kind: output, shape index: {}]  }
   0x1   :  { %v4_v0 = vld [vmem:[%s28_s0] ss:$0 sm:$0xff] }
   0x2   :  { %5 = vst [vmem:[%s29_s1] sm:$0xff] %v4_v0  ;;  %8 = vst [vmem:[%s29_s1 + $0x8] sm:$0xff] %v4_v0 }

// kernel: tile.9
= control target key start
LH: loop header
LB: loop body
LE: loop exit
PB: predicated region body
PF: predicated region fallthrough
CT: control target
= control target key end

     0   :  { %s131_s10 = smov 120   ;;  %s132_s11 = smov 104   ;;  %vm3_vm0 = vcmask 64512   ;;  %vm9_vm1 = vcmask 1048512   ;;  %vm15_vm2 = vcmask 982912   ;;  %vm21_vm3 = vcmask 917312   ;;  %s207_s0 = inlined_call_operand.vmem [shape: f32[16,8], index: 0, kind: input, shape index: {}]   ;;  %s208_s1 = inlined_call_operand.vmem [shape: f32[1,128], index: 1, kind: output, shape index: {}]  }
   0x1   :  { %v101_v0 = vld [vmem:[%s207_s0 + $0xf] sm:$0x1]   ;;  %v103_v1 = vld [vmem:[%s207_s0 + $0xd] sm:$0x1]   ;;  %v102_v2 = vld [vmem:[%s207_s0 + $0xe] sm:$0x1]  }
   0x2   :  { %7 = vrot.lane.b32.xlu0 %v101_v0, %s131_s10  ;;  %19 = vrot.lane.b32.xlu1 %v103_v1, %s132_s11  ;;  %v104_v3 = vld [vmem:[%s207_s0 + $0xc] sm:$0x1]   ;;  %s133_s16 = smov 112   ;;  %s134_s17 = smov 96   ;;  %v105_v4 = vld [vmem:[%s207_s0 + $0xb] sm:$0x1]  }
   0x3   :  { %v106_v5 = vld [vmem:[%s207_s0 + $0xa] sm:$0x1]   ;;  %v2_v6 = vld [vmem:[%s207_s0] sm:$0x1]   ;;  %s135_s24 = smov 88   ;;  %s136_s25 = smov 80  }
   0x4   :  { %4 = vst.msk [vmem:[#allocation0] sm:$0x1] %vm3_vm0, %v2_v6   ;;  %v107_v7 = vld [vmem:[%s207_s0 + $0x9] sm:$0x1]   ;;  %v108_v8 = vld [vmem:[%s207_s0 + $0x8] sm:$0x1]  }
   0x5   :  { %s137_s30 = smov 72   ;;  %s138_s2 = smov 64   ;;  %v109_v9 = vld [vmem:[%s207_s0 + $0x7] sm:$0x1]   ;;  %v110_v10 = vld [vmem:[%s207_s0 + $0x6] sm:$0x1]  }
   0x6   :  { %13 = vrot.lane.b32.xlu0 %v102_v2, %s133_s16  ;;  %25 = vrot.lane.b32.xlu1 %v104_v3, %s134_s17  ;;  %s139_s7 = smov 56   ;;  %s140_s8 = smov 48   ;;  %v111_v11 = vld [vmem:[%s207_s0 + $0x5] sm:$0x1]   ;;  %v112_v12 = vld [vmem:[%s207_s0 + $0x4] sm:$0x1]  }
   0x7   :  { %s141_s13 = smov 40   ;;  %s142_s14 = smov 32   ;;  %v113_v13 = vld [vmem:[%s207_s0 + $0x3] sm:$0x1]   ;;  %v114_v14 = vld [vmem:[%s207_s0 + $0x2] sm:$0x1]  }
   0x8   :  { %s143_s19 = smov 24   ;;  %s144_s20 = smov 16   ;;  %v115_v15 = vld [vmem:[%s207_s0 + $0x1] sm:$0x1]   ;;  %vm27_vm4 = vcmask 851712   ;;  %vm33_vm5 = vcmask 786112  }
   0x9   :  { %s145_s0 = smov 8   ;;  %vm39_vm6 = vcmask 720512   ;;  %vm45_vm7 = vcmask 654912   ;;  %vm51_vm8 = vcmask 589312   ;;  %vm57_vm9 = vcmask 523712  }
   0xa   :  { %31 = vrot.lane.b32.xlu0 %v105_v4, %s135_s24  ;;  %37 = vrot.lane.b32.xlu1 %v106_v5, %s136_s25  ;;  %vm63_vm10 = vcmask 458112   ;;  %vm69_vm11 = vcmask 392512   ;;  %vm75_vm12 = vcmask 326912   ;;  %vm81_vm13 = vcmask 261312  }
   0xb   :  { %vm87_vm14 = vcmask 195712   ;;  %vm93_vm15 = vcmask 130112  }
   0xe   :  { %43 = vrot.lane.b32.xlu0 %v107_v7, %s137_s30  ;;  %49 = vrot.lane.b32.xlu1 %v108_v8, %s138_s2 }
  0x12   :  { %55 = vrot.lane.b32.xlu0 %v109_v9, %s139_s7  ;;  %61 = vrot.lane.b32.xlu1 %v110_v10, %s140_s8 }
  0x16   :  { %67 = vrot.lane.b32.xlu0 %v111_v11, %s141_s13  ;;  %73 = vrot.lane.b32.xlu1 %v112_v12, %s142_s14 }
  0x1a   :  { %79 = vrot.lane.b32.xlu0 %v113_v13, %s143_s19  ;;  %85 = vrot.lane.b32.xlu1 %v114_v14, %s144_s20 }
  0x1e   :  { %91 = vrot.lane.b32.xlu0 %v115_v15, %s145_s0 }
  0x74   :  { %v8_v16 = vpop.permute.xlu0 %7   ;;  %v20_v17 = vpop.permute.xlu1 %19  }
  0x75   :  { %10 = vst.msk [vmem:[#allocation0] sm:$0x1] %vm9_vm1, %v8_v16  }
  0x78   :  { %v14_v18 = vpop.permute.xlu0 %13   ;;  %v26_v19 = vpop.permute.xlu1 %25  }
  0x79   :  { %16 = vst.msk [vmem:[#allocation0] sm:$0x1] %vm15_vm2, %v14_v18  }
  0x7a   :  { %22 = vst.msk [vmem:[#allocation0] sm:$0x1] %vm21_vm3, %v20_v17  }
  0x7b   :  { %28 = vst.msk [vmem:[#allocation0] sm:$0x1] %vm27_vm4, %v26_v19  }
  0x7c   :  { %v32_v20 = vpop.permute.xlu0 %31   ;;  %v38_v21 = vpop.permute.xlu1 %37  }
  0x7d   :  { %34 = vst.msk [vmem:[#allocation0] sm:$0x1] %vm33_vm5, %v32_v20  }
  0x7e   :  { %40 = vst.msk [vmem:[#allocation0] sm:$0x1] %vm39_vm6, %v38_v21  }
  0x80   :  { %v44_v22 = vpop.permute.xlu0 %43   ;;  %v50_v23 = vpop.permute.xlu1 %49  }
  0x81   :  { %46 = vst.msk [vmem:[#allocation0] sm:$0x1] %vm45_vm7, %v44_v22  }
  0x82   :  { %52 = vst.msk [vmem:[#allocation0] sm:$0x1] %vm51_vm8, %v50_v23  }
  0x84   :  { %v56_v24 = vpop.permute.xlu0 %55   ;;  %v62_v25 = vpop.permute.xlu1 %61  }
  0x85   :  { %58 = vst.msk [vmem:[#allocation0] sm:$0x1] %vm57_vm9, %v56_v24  }
  0x86   :  { %64 = vst.msk [vmem:[#allocation0] sm:$0x1] %vm63_vm10, %v62_v25  }
  0x88   :  { %v68_v26 = vpop.permute.xlu0 %67   ;;  %v74_v27 = vpop.permute.xlu1 %73  }
  0x89   :  { %70 = vst.msk [vmem:[#allocation0] sm:$0x1] %vm69_vm11, %v68_v26  }
  0x8a   :  { %76 = vst.msk [vmem:[#allocation0] sm:$0x1] %vm75_vm12, %v74_v27  }
  0x8c   :  { %v80_v28 = vpop.permute.xlu0 %79   ;;  %v86_v29 = vpop.permute.xlu1 %85  }
  0x8d   :  { %82 = vst.msk [vmem:[#allocation0] sm:$0x1] %vm81_vm13, %v80_v28  }
  0x8e   :  { %88 = vst.msk [vmem:[#allocation0] sm:$0x1] %vm87_vm14, %v86_v29  }
  0x90   :  { %v92_v30 = vpop.permute.xlu0 %91  }
  0x91   :  { %94 = vst.msk [vmem:[#allocation0] sm:$0x1] %vm93_vm15, %v92_v30  }
  0x98   :  { %v98_v31 = vld [vmem:[#allocation0] sm:$0x1] }
  0x99   :  { %100 = vst [vmem:[%s208_s1] sm:$0x1] %v98_v31 }

// kernel: conv_block.1
= control target key start
LH: loop header
LB: loop body
LE: loop exit
PB: predicated region body
PF: predicated region fallthrough
CT: control target
= control target key end

     0   :  { %s672_s18 = smov 0   ;;  %s757_s0 = inlined_call_operand.vmem [shape: bf16[2,16,216], index: 0, kind: input, shape index: {}]   ;;  %s758_s1 = inlined_call_operand.vmem [shape: bf16[216,128], index: 1, kind: input, shape index: {}]   ;;  %s759_s2 = inlined_call_operand.vmem [shape: f32[1,128], index: 2, kind: input, shape index: {}]   ;;  %s760_s3 = inlined_call_operand.vmem [shape: f32[2,8], index: 3, kind: input, shape index: {}]   ;;  %s761_s4 = inlined_call_operand.vmem [shape: f32[2,8], index: 4, kind: input, shape index: {}]   ;;  %s762_s5 = inlined_call_operand.vmem [shape: f32[2,8,64], index: 5, kind: output, shape index: {}]  }
   0x1 LB: > { %s551_s19 = sadd.s32 4294967295, %s628_s18   ;;  %p555_p0 = scmp.ge.s32.totalorder %s628_s18, 1  ;;  %s628_s18 = sphi %s672_s18, %s15_s18  }
   0x2   : > { %p187_p1 = scmp.lt.s32.totalorder %s628_s18, 3 }
   0x4   : > { %p188_p2 = pnand %p555_p0, %p187_p1 }
   0x5   : > { %v601_v0 = vld [vmem:[%s758_s1] sm:$0xff] (!%p188_p2)   ;;  %v630_v1 = vmov (!%p188_p2), 0   ;;  %v602_v2 = vld [vmem:[%s758_s1 + $0x8] sm:$0xff] (!%p188_p2)   ;;  %p214_p3 = scmp.lt.s32.totalorder (!%p188_p2), %s551_s19, 1  ;;  %v603_v3 = vld [vmem:[%s758_s1 + $0x10] sm:$0xff] (!%p188_p2)   ;;  %vm350_vm0 = vcmask (!%p188_p2), 719872   ;;  %v430_v39 = vlaneseq (!%p188_p2) }
   0x6   : > { %191 = sbr.rel (%p188_p2) target bundleno = 1100 (0x44c), region = 40  ;;  %358 = vmatprep.subr.bf16.mxu0 (!%p188_p2), %v630_v1  ;;  %v604_v4 = vld [vmem:[%s758_s1 + $0x18] sm:$0xff] (!%p188_p2)   ;;  %v605_v5 = vld [vmem:[%s758_s1 + $0x20] sm:$0xff] (!%p188_p2)   ;;  %v606_v7 = vld [vmem:[%s758_s1 + $0x28] sm:$0xff] (!%p188_p2)   ;;  %vm354_vm1 = vcmask (!%p188_p2), 1043456   ;;  %s631_s7 = smov (!%p188_p2), 64  }
   0x7   : > { %359 = vmatpush1.bf16.msra.mxu0 (!%p188_p2), %v601_v0  ;;  %v607_v8 = vld [vmem:[%s758_s1 + $0x30] sm:$0xff] (!%p188_p2)   ;;  %v608_v9 = vld [vmem:[%s758_s1 + $0x38] sm:$0xff] (!%p188_p2)   ;;  %v609_v10 = vld [vmem:[%s758_s1 + $0x40] sm:$0xff] (!%p188_p2)   ;;  %vm405_vm2 = vcmask (!%p188_p2), 523264   ;;  %s633_s8 = smov (!%p188_p2), 112   ;;  %s634_s9 = smov (!%p188_p2), 120  }
   0x8   : > { %360 = vmatprep.subr.bf16.mxu0 (!%p188_p2), %v630_v1  ;;  %v610_v11 = vld [vmem:[%s758_s1 + $0x48] sm:$0xff] (!%p188_p2)   ;;  %v611_v12 = vld [vmem:[%s758_s1 + $0x50] sm:$0xff] (!%p188_p2)   ;;  %v612_v13 = vld [vmem:[%s758_s1 + $0x58] sm:$0xff] (!%p188_p2)   ;;  %v739_v40 = vshrl.u32 (!%p188_p2), %v430_v39, 7  ;;  %vm435_vm3 = vcmask (!%p188_p2), 58368   ;;  %s635_s14 = smov (!%p188_p2), 8  }
   0x9   : > { %v613_v14 = vld [vmem:[%s758_s1 + $0x60] sm:$0xff] (!%p188_p2)   ;;  %v614_v15 = vld [vmem:[%s758_s1 + $0x68] ss:$0 sps:$4 sm:$0xff] (!%p188_p2)   ;;  %s636_s15 = smov (!%p188_p2), 16   ;;  %s637_s16 = smov (!%p188_p2), 24   ;;  %vm477_vm4 = vcmask (!%p188_p2), 64512  }
   0xa   : > { %v356_v16 = vsel (!%p188_p2), %vm354_vm1, %v614_v15, 0  ;;  %v559_v18 = vld [vmem:[%s759_s2] ss:$0 sm:$0xff] (!%p188_p2)  ;;  %v432_v42 = vsub.s32 (!%p188_p2), 0, %v739_v40  ;;  %s638_s17 = smov (!%p188_p2), 32   ;;  %s639_s20 = smov (!%p188_p2), 40  }
   0xb   : > { %361 = vmatpush1.bf16.msra.mxu0 (!%p188_p2), %v602_v2  ;;  %v429_v45 = vld [vmem:[%s760_s3] sm:$0x3] (!%p188_p2)  ;;  %s640_s21 = smov (!%p188_p2), 48   ;;  %s641_s22 = smov (!%p188_p2), 56   ;;  %vm479_vm5 = vcmask (!%p188_p2), 130048   ;;  %vm481_vm6 = vcmask (!%p188_p2), 195584  }
   0xc   : > { %362 = vmatprep.subr.bf16.mxu0 (!%p188_p2), %v630_v1  ;;  %v440_v49 = vld [vmem:[%s761_s4] sm:$0x3] (!%p188_p2)  ;;  %vm483_vm7 = vcmask (!%p188_p2), 261120   ;;  %vm485_vm8 = vcmask (!%p188_p2), 326656   ;;  %vm487_vm9 = vcmask (!%p188_p2), 392192   ;;  %vm489_vm10 = vcmask (!%p188_p2), 457728  }
   0xd   : > { %s764_s19 = smov (!%p214_p3, %s551_s19), 1 }
   0xe   : > { %s580_s26 = sshll.u32 %s764_s19, 4  ;;  %s558_s23 = sshll.u32 %s764_s19, 3 }
   0xf   : > { %363 = vmatpush1.bf16.msra.mxu0 %v603_v3  ;;  %s698_s6 = scalar_lea.vmem %s757_s0, %s580_s26  ;;  %s222_s26 = scalar_lea.vmem %s762_s5, %s558_s23 }
  0x10   : > { %364 = vmatprep.subr.bf16.mxu0 %v630_v1  ;;  %v617_v6 = vld [vmem:[%s698_s6 + $0x4] ss:$8 sps:$4 sm:$0xff]   ;;  %v615_v17 = vld [vmem:[%s698_s6] ss:$8 sps:$4 sm:$0xff]   ;;  %s632_s6 = smov 96  }
  0x11   : > { %576 = vmatprep.mubr.msk.bf16.mxu0 %vm350_vm0, %v617_v6 }
  0x13   : > { %365 = vmatpush1.bf16.msra.mxu0 %v604_v4 }
  0x14   : > { %366 = vmatprep.subr.bf16.mxu0 %v630_v1 }
  0x17   : > { %367 = vmatpush1.bf16.msra.mxu0 %v605_v5 }
  0x18   : > { %368 = vmatprep.subr.bf16.mxu0 %v630_v1 }
  0x1b   : > { %369 = vmatpush1.bf16.msra.mxu0 %v606_v7 }
  0x1c   : > { %370 = vmatprep.subr.bf16.mxu0 %v630_v1 }
  0x1f   : > { %371 = vmatpush1.bf16.msra.mxu0 %v607_v8 }
  0x20   : > { %372 = vmatprep.subr.bf16.mxu0 %v630_v1 }
  0x23   : > { %373 = vmatpush1.bf16.msra.mxu0 %v608_v9 }
  0x24   : > { %374 = vmatprep.subr.bf16.mxu0 %v630_v1 }
  0x27   : > { %375 = vmatpush1.bf16.msra.mxu0 %v609_v10 }
  0x28   : > { %376 = vmatprep.subr.bf16.mxu0 %v630_v1 }
  0x2b   : > { %377 = vmatpush1.bf16.msra.mxu0 %v610_v11 }
  0x2c   : > { %378 = vmatprep.subr.bf16.mxu0 %v630_v1 }
  0x2f   : > { %379 = vmatpush1.bf16.msra.mxu0 %v611_v12 }
  0x30   : > { %380 = vmatprep.subr.bf16.mxu0 %v630_v1 }
  0x33   : > { %381 = vmatpush1.bf16.msra.mxu0 %v612_v13 }
  0x34   : > { %382 = vmatprep.subr.bf16.mxu0 %v630_v1 }
  0x37   : > { %383 = vmatpush1.bf16.msra.mxu0 %v613_v14 }
  0x38   : > { %384 = vmatprep.subr.bf16.mxu0 %v630_v1 }
  0x3b   : > { %385 = vmatpush1.bf16.msra.mxu0 %v356_v16 }
  0x3e   : > { %391 = vmatmul.mubr.bf16.vlgmr.msra.gmra.mrb[0].mxu0 %v615_v17 }
 0x111   : > { %v392_v19 = vpop.f32.mrb[0].mxu0 }
 0x112   : > { %v394_v20 = vpop.f32.mrb[1].mxu0  ;;  %v393_v22 = vadd.f32 %v559_v18, %v392_v19 }
 0x113   : > { %v395_v21 = vpop.f32.mrb[2].mxu0 }
 0x114   : > { %v396_v23 = vadd.f32 %v559_v18, %v395_v21  ;;  %v397_v24 = vpop.f32.mrb[3].mxu0 }
 0x116   : > { %v399_v25 = vmax.f32 %v393_v22, %v396_v23 }
 0x118   : > { %401 = vrot.lane.b32.xlu0 %v399_v25, %s631_s7 }
 0x18a   : > { %v402_v26 = vpop.permute.xlu0 %401 }
 0x18b   : > { %v735_v27 = vmax.f32 %v399_v25, %v402_v26 }
 0x18d   : > { %v406_v28 = vsel %vm405_vm2, %v735_v27, 0.0 }
 0x18e   : > { %v407_v29 = vrot.slane %v406_v28, 4 }
 0x190   : > { %v408_v30 = vadd.f32 %v407_v29, %v406_v28 }
 0x192   : > { %v409_v31 = vrot.slane %v408_v30, 2 }
 0x194   : > { %v410_v32 = vadd.f32 %v409_v31, %v408_v30 }
 0x196   : > { %v411_v33 = vrot.slane %v410_v32, 1 }
 0x198   : > { %v412_v34 = vadd.f32 %v411_v33, %v410_v32 }
 0x19a   : > { %414 = vrot.lane.b32.xlu0 %v412_v34, %s632_s6 }
 0x20c   : > { %v415_v35 = vpop.permute.xlu0 %414 }
 0x20d   : > { %v417_v36 = vadd.f32 %v415_v35, %v412_v34 }
 0x20f   : > { %419 = vrot.lane.b32.xlu1 %v417_v36, %s633_s8 }
 0x281   : > { %v420_v37 = vpop.permute.xlu1 %419 }
 0x282   : > { %v422_v38 = vadd.f32 %v420_v37, %v417_v36 }
 0x284   : > { %424 = vrot.lane.b32.xlu1 %v422_v38, %s634_s9 }
 0x2f6   : > { %v425_v41 = vpop.permute.xlu1 %424 }
 0x2f7   : > { %v427_v43 = vadd.f32 %v425_v41, %v422_v38 }
 0x2f9   : > { %v428_v44 = vmul.f32 0.015625, %v427_v43 }
 0x2fb   : > { %v433_v46 = vrot.slane %v428_v44, %v432_v42 }
 0x2fd   : > { %v434_v47 = vmul.f32 %v433_v46, %v429_v45 }
 0x2ff   : > { %v436_v48 = vsel %vm435_vm3, %v434_v47, 0.0 }
 0x300   : > { %437 = vadd.xlane.f32.xlu0 %v436_v48 }
 0x38d   : > { %v438_v50 = vpop.xlane.xlu0 %437 }
 0x38e   : > { %v439_v51 = vmax.f32 %v438_v50, 0.0 }
 0x390   : > { %v441_v52 = vmul.f32 %v440_v49, %v439_v51 }
 0x392   : > { %v442_v53 = vsel %vm435_vm3, %v441_v52, 0.0 }
 0x393   : > { %v443_v54 = vrot.slane %v442_v53, 4 }
 0x395   : > { %v444_v55 = vadd.f32 %v443_v54, %v442_v53 }
 0x397   : > { %v445_v56 = vrot.slane %v444_v55, 2 }
 0x399   : > { %v446_v57 = vadd.f32 %v445_v56, %v444_v55 }
 0x39b   : > { %v447_v58 = vrot.slane %v446_v57, 1 }
 0x39d   : > { %v448_v59 = vadd.f32 %v447_v58, %v446_v57 }
 0x39f   : > { %v577_v60 = vmul.f32 -1.442695, %v448_v59 }
 0x3a1   : > { %618 = vpow2.f32 %v577_v60 }
 0x3ab   : > { %v619_v61 = vpop.eup %618 }
 0x3ac   : > { %v452_v62 = vadd.f32 1.0, %v619_v61 }
 0x3ae   : > { %620 = vrcp.f32 %v452_v62 }
 0x3b8   : > { %v621_v63 = vpop.eup %620 }
 0x3b9   : > { %456 = vrot.lane.b32.xlu1 %v621_v63, %s635_s14 }
 0x3bd   : > { %459 = vrot.lane.b32.xlu1 %v621_v63, %s636_s15 }
 0x3c1   : > { %462 = vrot.lane.b32.xlu1 %v621_v63, %s637_s16 }
 0x3c5   : > { %465 = vrot.lane.b32.xlu1 %v621_v63, %s638_s17 }
 0x3c9   : > { %468 = vrot.lane.b32.xlu1 %v621_v63, %s639_s20 }
 0x3cd   : > { %471 = vrot.lane.b32.xlu1 %v621_v63, %s640_s21 }
 0x3d1   : > { %474 = vrot.lane.b32.xlu1 %v621_v63, %s641_s22 }
 0x42b   : > { %v457_v0 = vpop.permute.xlu1 %456 }
 0x42c   : > { %v478_v5 = vsel %vm477_vm4, %v621_v63, %v457_v0 }
 0x42f   : > { %v460_v1 = vpop.permute.xlu1 %459 }
 0x430   : > { %v480_v6 = vsel %vm479_vm5, %v478_v5, %v460_v1 }
 0x433   : > { %v463_v2 = vpop.permute.xlu1 %462 }
 0x434   : > { %v482_v8 = vsel %vm481_vm6, %v480_v6, %v463_v2 }
 0x437   : > { %v466_v3 = vpop.permute.xlu1 %465 }
 0x438   : > { %v484_v9 = vsel %vm483_vm7, %v482_v8, %v466_v3 }
 0x43b   : > { %v469_v4 = vpop.permute.xlu1 %468 }
 0x43c   : > { %v486_v10 = vsel %vm485_vm8, %v484_v9, %v469_v4 }
 0x43f   : > { %v472_v7 = vpop.permute.xlu1 %471 }
 0x440   : > { %v488_v11 = vsel %vm487_vm9, %v486_v10, %v472_v7 }
 0x443   : > { %v475_v12 = vpop.permute.xlu1 %474 }
 0x444   : > { %v490_v13 = vsel %vm489_vm10, %v488_v11, %v475_v12 }
 0x445   : > { %v494_v14 = vrot.slane %v490_v13, %v432_v42 }
 0x447   : > { %v495_v15 = vmul.f32 %v494_v14, %v735_v27 }
 0x449   : > { %v496_v16 = vmax.f32 %v495_v15, 0.0 }
 0x44b   : > { %497 = vst.msk [vmem:[%s222_s26] sm:$0xff] %vm405_vm2, %v496_v16 }
 0x44c PF: > { %s15_s18 = sadd.s32 1, %s628_s18  }
 0x44d   : > { %p12_p4 = scmp.ge.s32.totalorder %s15_s18, 4  }
 0x44f   :  { %14 = sbr.rel (!%p12_p4) target bundleno = 1 (0x1), region = 70 }

</bundles_post_ra>
